<compile_context>
chip_gen: v7x
topology: tpu7x:2x2x1
jax: 0.10.0
libtpu: 0.0.40
codegen_flags: <defaults>
</compile_context>

<pallas_src>
import jax
import jax.numpy as jnp
from jax.experimental import pallas as pl
from jax.experimental.pallas import tpu as pltpu


def _round_up(x, m):
    return (x + m - 1) // m * m


def dqn_kernel(x_ref, w1_ref, b1_ref, w2_ref, b2_ref, w3_ref, b3_ref, o_ref):
    # Cast the f32 state tile to the weight dtype (bf16) on the VPU; all
    # matmuls accumulate in f32 on the MXU, bias-add / ReLU stay f32.
    x = x_ref[...].astype(w1_ref.dtype)
    h1 = jnp.dot(x, w1_ref[...], preferred_element_type=jnp.float32)
    h1 = jnp.maximum(h1 + b1_ref[...], 0.0)
    h2 = jnp.dot(h1.astype(w2_ref.dtype), w2_ref[...],
                 preferred_element_type=jnp.float32)
    h2 = jnp.maximum(h2 + b2_ref[...], 0.0)
    q = jnp.dot(h2.astype(w3_ref.dtype), w3_ref[...],
                preferred_element_type=jnp.float32)
    # Tiny-A output block: masked store, but minimal HBM write bytes.
    o_ref[...] = (q + b3_ref[...]).astype(o_ref.dtype)


def prepare_params(params, compute_dtype=jnp.bfloat16):
    """One-time prep: cast weights to bf16 and reshape biases to (1, N) f32.

    Pass compute_dtype=jnp.float32 for exact f32 parity with PyTorch.
    """
    w1, b1, w2, b2, w3, b3 = params
    return (w1.astype(compute_dtype), b1.reshape(1, -1).astype(jnp.float32),
            w2.astype(compute_dtype), b2.reshape(1, -1).astype(jnp.float32),
            w3.astype(compute_dtype), b3.reshape(1, -1).astype(jnp.float32))


def dqn_forward(state, params, *, batch_tile=None):
    """Forward pass of DeepQNetwork. state: (B, input_dims) float32.

    `params` may be raw f32 params or the output of prepare_params (preferred:
    avoids per-call weight casts)."""
    w1, b1, w2, b2, w3, b3 = params
    B, F = state.shape
    L1 = w1.shape[1]
    L2 = w2.shape[1]
    A = w3.shape[1]

    # ---- batch tiling: multiple of 16, capped at 1024.  Small B => one grid
    # step (no pipelining to be had, minimal padding); large B => many steps,
    # so DMA overlaps compute and v7x can shard the "parallel" axis on 2 TCs.
    if batch_tile is None:
        tb = min(_round_up(B, 16), 1024)
    else:
        tb = _round_up(batch_tile, 16)
    B_pad = _round_up(B, tb)
    grid = (B_pad // tb,)

    # ---- operands: state stays f32 (cast happens inside the kernel), weights
    # are bf16 (no-op if already prepared), biases f32 shaped (1, N).
    x = state
    if B_pad != B:
        # Padded rows compute ReLU(b) on zeros and are sliced off below.
        x = jnp.pad(x, ((0, B_pad - B), (0, 0)))
    w1c, w2c, w3c = w1, w2, w3
    b1r = b1.reshape(1, L1).astype(jnp.float32)
    b2r = b2.reshape(1, L2).astype(jnp.float32)
    b3r = b3.reshape(1, A).astype(jnp.float32)

    # ---- advisory cost estimate + a tight VMEM limit (v7x only has 64 MiB).
    w_bytes = int(w1c.size * w1c.dtype.itemsize
                  + w2c.size * w2c.dtype.itemsize
                  + w3c.size * w3c.dtype.itemsize)
    b_bytes = (L1 + L2 + A) * 4
    flops = 2 * B_pad * (F * L1 + L1 * L2 + L2 * A)
    bytes_accessed = B_pad * F * 4 + w_bytes + b_bytes + B_pad * A * 4
    vmem_need = (
        2 * tb * F * 4                 # double-buffered state tiles
        + 2 * tb * A * 4               # double-buffered output tiles
        + 2 * (w_bytes + b_bytes)      # resident weights/biases (2 bufs)
        + 4 * tb * max(L1, L2) * 4     # intermediates / headroom
    )
    vmem_limit = int(min(max(2 * vmem_need, 4 * 1024 * 1024), 32 * 1024 * 1024))

    out = pl.pallas_call(
        dqn_kernel,
        out_shape=jax.ShapeDtypeStruct((B_pad, A), jnp.float32),
        grid_spec=pltpu.PrefetchScalarGridSpec(
            num_scalar_prefetch=0,
            grid=grid,
            in_specs=[
                pl.BlockSpec((tb, F), lambda i: (i, 0)),   # state tile (pipelined)
                pl.BlockSpec((F, L1), lambda i: (0, 0)),   # W1 (resident)
                pl.BlockSpec((1, L1), lambda i: (0, 0)),   # b1
                pl.BlockSpec((L1, L2), lambda i: (0, 0)),  # W2 (resident)
                pl.BlockSpec((1, L2), lambda i: (0, 0)),   # b2
                pl.BlockSpec((L2, A), lambda i: (0, 0)),   # W3 (resident)
                pl.BlockSpec((1, A), lambda i: (0, 0)),    # b3
            ],
            out_specs=pl.BlockSpec((tb, A), lambda i: (i, 0)),
        ),
        compiler_params=pltpu.CompilerParams(
            dimension_semantics=("parallel",),
            vmem_limit_bytes=vmem_limit,
        ),
        cost_estimate=pl.CostEstimate(
            flops=flops, transcendentals=0, bytes_accessed=bytes_accessed),
    )(x, w1c, b1r, w2c, b2r, w3c, b3r)

    if B_pad != B:
        out = out[:B]
    return out


def init_dqn_params(key, input_dims, layer1_dims, layer2_dims, q_actions):
    """Deterministic init mimicking nn.Linear's U(-1/sqrt(fan_in), 1/sqrt(fan_in)).
    Weights are stored transposed: (in_features, out_features)."""
    def linear(key, fan_in, fan_out):
        kw, kb = jax.random.split(key)
        bound = 1.0 / jnp.sqrt(jnp.float32(fan_in))
        w = jax.random.uniform(kw, (fan_in, fan_out), jnp.float32, -bound, bound)
        b = jax.random.uniform(kb, (fan_out,), jnp.float32, -bound, bound)
        return w, b

    k1, k2, k3 = jax.random.split(key, 3)
    w1, b1 = linear(k1, input_dims, layer1_dims)
    w2, b2 = linear(k2, layer1_dims, layer2_dims)
    w3, b3 = linear(k3, layer2_dims, q_actions)
    return (w1, b1, w2, b2, w3, b3)


def ref_forward(state, params, compute_dtype=jnp.bfloat16):
    """Plain-JAX reference with the same bf16 operands / f32-accumulate math."""
    w1, b1, w2, b2, w3, b3 = params
    cd = compute_dtype
    h1 = jnp.maximum(jnp.dot(state.astype(cd), w1.astype(cd),
                             preferred_element_type=jnp.float32) + b1, 0.0)
    h2 = jnp.maximum(jnp.dot(h1.astype(cd), w2.astype(cd),
                             preferred_element_type=jnp.float32) + b2, 0.0)
    return jnp.dot(h2.astype(cd), w3.astype(cd),
                   preferred_element_type=jnp.float32) + b3


if __name__ == "__main__":
    # Small shapes consistent with the module's forward: state is (batch, input_dims)
    batch = 8
    input_dims = 16
    layer1_dims = 32
    layer2_dims = 32
    q_actions = 4

    key = jax.random.PRNGKey(0)
    kp, kx = jax.random.split(key)
    params = init_dqn_params(kp, input_dims, layer1_dims, layer2_dims, q_actions)
    prepared = prepare_params(params)   # one-time bf16 weight cast (not per call)
    state = jax.random.normal(kx, (batch, input_dims), jnp.float32)

    actions = dqn_forward(state, prepared)
    actions = jax.block_until_ready(actions)
    assert actions.shape == (batch, q_actions)

    # Matched-precision reference (bf16 operands, f32 accumulation) -> tight tol.
    ref_bf16 = ref_forward(state, params, jnp.bfloat16)
    assert jnp.allclose(actions, ref_bf16, atol=2e-3, rtol=2e-3)

    # Full-f32 reference (same math as the PyTorch forward) -> loose tol for
    # the bf16 cast of inputs/weights.
    w1, b1, w2, b2, w3, b3 = params
    h1 = jnp.maximum(state @ w1 + b1, 0.0)
    h2 = jnp.maximum(h1 @ w2 + b2, 0.0)
    ref_f32 = h2 @ w3 + b3
    assert jnp.allclose(actions, ref_f32, atol=5e-2, rtol=5e-2)

    print("KERNEL_OK")
</pallas_src>

<mosaic_0001>
module attributes {stable_mosaic.version = 11 : i64} {
  func.func @dqn_kernel(%arg0: i32, %arg1: memref<16x16xf32, #tpu.memory_space<vmem>>, %arg2: memref<16x32xbf16, #tpu.memory_space<vmem>>, %arg3: memref<1x32xf32, #tpu.memory_space<vmem>>, %arg4: memref<32x32xbf16, #tpu.memory_space<vmem>>, %arg5: memref<1x32xf32, #tpu.memory_space<vmem>>, %arg6: memref<32x4xbf16, #tpu.memory_space<vmem>>, %arg7: memref<1x4xf32, #tpu.memory_space<vmem>>, %arg8: memref<16x4xf32, #tpu.memory_space<vmem>>) attributes {dimension_semantics = [#tpu.dimension_semantics<parallel>], iteration_bounds = array<i64: 1>, scalar_prefetch = 0 : i64, scratch_operands = 0 : i64, tpu.core_type = #tpu.core_type<tc>, window_params = [{transform_indices = @transform_0, window_bounds = array<i64: 16, 16>}, {pipeline_mode = #tpu.pipeline_mode<synchronous>, transform_indices = @transform_1, window_bounds = array<i64: 16, 32>}, {pipeline_mode = #tpu.pipeline_mode<synchronous>, transform_indices = @transform_2, window_bounds = array<i64: 1, 32>}, {pipeline_mode = #tpu.pipeline_mode<synchronous>, transform_indices = @transform_3, window_bounds = array<i64: 32, 32>}, {pipeline_mode = #tpu.pipeline_mode<synchronous>, transform_indices = @transform_4, window_bounds = array<i64: 1, 32>}, {pipeline_mode = #tpu.pipeline_mode<synchronous>, transform_indices = @transform_5, window_bounds = array<i64: 32, 4>}, {pipeline_mode = #tpu.pipeline_mode<synchronous>, transform_indices = @transform_6, window_bounds = array<i64: 1, 4>}, {transform_indices = @transform_7, window_bounds = array<i64: 16, 4>}]} {
    %c0 = arith.constant 0 : index
    %c0_0 = arith.constant 0 : index
    %0 = vector.load %arg1[%c0, %c0_0] : memref<16x16xf32, #tpu.memory_space<vmem>>, vector<16x16xf32>
    %1 = arith.truncf %0 : vector<16x16xf32> to vector<16x16xbf16>
    %c0_1 = arith.constant 0 : index
    %c0_2 = arith.constant 0 : index
    %2 = vector.load %arg2[%c0_1, %c0_2] : memref<16x32xbf16, #tpu.memory_space<vmem>>, vector<16x32xbf16>
    %cst = arith.constant dense<0.000000e+00> : vector<16x32xf32>
    %3 = tpu.matmul %1, %2, %cst {dimension_numbers = #tpu.dot_dimension_numbers<[1], [0], [0], [1], [0, 0, 1, 1], [], []>} : vector<16x16xbf16>, vector<16x32xbf16>, vector<16x32xf32> -> vector<16x32xf32>
    %c0_3 = arith.constant 0 : index
    %c0_4 = arith.constant 0 : index
    %4 = vector.load %arg3[%c0_3, %c0_4] : memref<1x32xf32, #tpu.memory_space<vmem>>, vector<1x32xf32>
    %5 = vector.broadcast %4 : vector<1x32xf32> to vector<16x32xf32>
    %6 = arith.addf %3, %5 : vector<16x32xf32>
    %cst_5 = arith.constant 0.000000e+00 : f32
    %7 = vector.broadcast %cst_5 : f32 to vector<16x32xf32>
    %8 = arith.maximumf %6, %7 : vector<16x32xf32>
    %9 = arith.truncf %8 : vector<16x32xf32> to vector<16x32xbf16>
    %c0_6 = arith.constant 0 : index
    %c0_7 = arith.constant 0 : index
    %10 = vector.load %arg4[%c0_6, %c0_7] : memref<32x32xbf16, #tpu.memory_space<vmem>>, vector<32x32xbf16>
    %cst_8 = arith.constant dense<0.000000e+00> : vector<16x32xf32>
    %11 = tpu.matmul %9, %10, %cst_8 {dimension_numbers = #tpu.dot_dimension_numbers<[1], [0], [0], [1], [0, 0, 1, 1], [], []>} : vector<16x32xbf16>, vector<32x32xbf16>, vector<16x32xf32> -> vector<16x32xf32>
    %c0_9 = arith.constant 0 : index
    %c0_10 = arith.constant 0 : index
    %12 = vector.load %arg5[%c0_9, %c0_10] : memref<1x32xf32, #tpu.memory_space<vmem>>, vector<1x32xf32>
    %13 = vector.broadcast %12 : vector<1x32xf32> to vector<16x32xf32>
    %14 = arith.addf %11, %13 : vector<16x32xf32>
    %cst_11 = arith.constant 0.000000e+00 : f32
    %15 = vector.broadcast %cst_11 : f32 to vector<16x32xf32>
    %16 = arith.maximumf %14, %15 : vector<16x32xf32>
    %17 = arith.truncf %16 : vector<16x32xf32> to vector<16x32xbf16>
    %c0_12 = arith.constant 0 : index
    %c0_13 = arith.constant 0 : index
    %18 = vector.load %arg6[%c0_12, %c0_13] : memref<32x4xbf16, #tpu.memory_space<vmem>>, vector<32x4xbf16>
    %cst_14 = arith.constant dense<0.000000e+00> : vector<16x4xf32>
    %19 = tpu.matmul %17, %18, %cst_14 {dimension_numbers = #tpu.dot_dimension_numbers<[1], [0], [0], [1], [0, 0, 1, 1], [], []>} : vector<16x32xbf16>, vector<32x4xbf16>, vector<16x4xf32> -> vector<16x4xf32>
    %c0_15 = arith.constant 0 : index
    %c0_16 = arith.constant 0 : index
    %20 = vector.load %arg7[%c0_15, %c0_16] : memref<1x4xf32, #tpu.memory_space<vmem>>, vector<1x4xf32>
    %21 = vector.broadcast %20 : vector<1x4xf32> to vector<16x4xf32>
    %22 = arith.addf %19, %21 : vector<16x4xf32>
    %c0_17 = arith.constant 0 : index
    %c0_18 = arith.constant 0 : index
    %23 = vector.load %arg8[%c0_17, %c0_18] : memref<16x4xf32, #tpu.memory_space<vmem>>, vector<16x4xf32>
    tpu.vector_store %arg8[%c0_17, %c0_18], %22 {strides = array<i32>} : memref<16x4xf32, #tpu.memory_space<vmem>>, vector<16x4xf32>,
    return
  }
  func.func @transform_0(%arg0: i32) -> (i32, i32) {
    %c0_i32 = arith.constant 0 : i32
    %c0_i32_0 = arith.constant 0 : i32
    return %arg0, %c0_i32 : i32, i32
  }
  func.func @transform_1(%arg0: i32) -> (i32, i32) {
    %c0_i32 = arith.constant 0 : i32
    %c0_i32_0 = arith.constant 0 : i32
    %c0_i32_1 = arith.constant 0 : i32
    return %c0_i32, %c0_i32_0 : i32, i32
  }
  func.func @transform_2(%arg0: i32) -> (i32, i32) {
    %c0_i32 = arith.constant 0 : i32
    %c0_i32_0 = arith.constant 0 : i32
    %c0_i32_1 = arith.constant 0 : i32
    return %c0_i32, %c0_i32_0 : i32, i32
  }
  func.func @transform_3(%arg0: i32) -> (i32, i32) {
    %c0_i32 = arith.constant 0 : i32
    %c0_i32_0 = arith.constant 0 : i32
    %c0_i32_1 = arith.constant 0 : i32
    return %c0_i32, %c0_i32_0 : i32, i32
  }
  func.func @transform_4(%arg0: i32) -> (i32, i32) {
    %c0_i32 = arith.constant 0 : i32
    %c0_i32_0 = arith.constant 0 : i32
    %c0_i32_1 = arith.constant 0 : i32
    return %c0_i32, %c0_i32_0 : i32, i32
  }
  func.func @transform_5(%arg0: i32) -> (i32, i32) {
    %c0_i32 = arith.constant 0 : i32
    %c0_i32_0 = arith.constant 0 : i32
    %c0_i32_1 = arith.constant 0 : i32
    return %c0_i32, %c0_i32_0 : i32, i32
  }
  func.func @transform_6(%arg0: i32) -> (i32, i32) {
    %c0_i32 = arith.constant 0 : i32
    %c0_i32_0 = arith.constant 0 : i32
    %c0_i32_1 = arith.constant 0 : i32
    return %c0_i32, %c0_i32_0 : i32, i32
  }
  func.func @transform_7(%arg0: i32) -> (i32, i32) {
    %c0_i32 = arith.constant 0 : i32
    %c0_i32_0 = arith.constant 0 : i32
    return %arg0, %c0_i32 : i32, i32
  }
}

</mosaic_0001>

<bundles_post_ra>
// kernel: tpu_custom_call.1
= control target key start
LH: loop header
LB: loop body
LE: loop exit
PB: predicated region body
PF: predicated region fallthrough
CT: control target
= control target key end

     0   :  { %12 = vsyncpa [#allocation3], 0  ;;  %s467_s0 = inlined_call_operand.vmem [shape: f32[16,16], index: 0, kind: input, shape index: {}]   ;;  %s468_s1 = inlined_call_operand.hbm [shape: bf16[16,32], index: 1, kind: input, shape index: {}]   ;;  %s469_s2 = inlined_call_operand.vmem [shape: f32[1,32], index: 2, kind: input, shape index: {}]   ;;  %s470_s3 = inlined_call_operand.hbm [shape: bf16[32,32], index: 3, kind: input, shape index: {}]   ;;  %s471_s4 = inlined_call_operand.vmem [shape: f32[1,32], index: 4, kind: input, shape index: {}]   ;;  %s472_s5 = inlined_call_operand.vmem [shape: bf16[32,4], index: 5, kind: input, shape index: {}]   ;;  %s473_s6 = inlined_call_operand.vmem [shape: f32[1,4], index: 6, kind: input, shape index: {}]   ;;  %s474_s7 = inlined_call_operand.vmem [shape: f32[16,4], index: 7, kind: output, shape index: {}]  }
   0x1   :  { %13 = vsyncpa [#allocation5], 0  ;;  %s368_s24 = smov [#allocation2]   ;;  %s320_s28 = scalar_lea.hbm %s468_s1, 128 }
   0x2   :  { %s21_s25 = sshll.u32 %s368_s24, 4  ;;  %p321_p0 = scmp.ne.s32.totalorder %s468_s1, %s320_s28  ;;  %s22_s25 = int_to_ptr.vmem [resolvable:$true] %s21_s25 }
   0x3   :  { %p324_p1 = scmp.lt.u32.totalorder %s320_s28, %s468_s1 }
   0x5   :  { %p326_p2 = pnand %p324_p1, %p321_p0 }
   0x7   :  { %329 = shalt.err (!%p326_p2)
}
   0x8   :  { %s330_s10 = scalar_lea.vmem %s22_s25, 128  ;;  %p335_p4 = scmp.lt.s32.totalorder %s22_s25, %s22_s25 }
   0x9   :  { %p331_p3 = scmp.ne.s32.totalorder %s22_s25, %s330_s10  ;;  %p336_p5 = scmp.lt.s32.totalorder %s330_s10, %s330_s10 }
   0xb   :  { %p337_p6 = por %p336_p5, %p335_p4 }
   0xd   :  { %p338_p7 = pnand %p337_p6, %p331_p3 }
   0xf   :  { %341 = shalt.err (!%p338_p7)
}
  0x10   :  { %s369_s11 = smov 64   ;;  %s370_s12 = smov 4  }
  0x11   :  { %27 = dma.hbm_to_vmem [thread:$0]  %s468_s1, 128, %s22_s25, [#allocation3], %s369_s11, %s369_s11, %s370_s12  }
  0x12   :  { %s371_s15 = smov [#allocation4]   ;;  %s342_s19 = scalar_lea.hbm %s470_s3, 256 }
  0x13   :  { %s35_s16 = sshll.u32 %s371_s15, 4  ;;  %p343_p8 = scmp.ne.s32.totalorder %s470_s3, %s342_s19  ;;  %s36_s16 = int_to_ptr.vmem [resolvable:$true] %s35_s16 }
  0x14   :  { %p346_p9 = scmp.lt.u32.totalorder %s342_s19, %s470_s3 }
  0x16   :  { %p348_p10 = pnand %p346_p9, %p343_p8 }
  0x18   :  { %351 = shalt.err (!%p348_p10)
}
  0x19   :  { %s352_s24 = scalar_lea.vmem %s36_s16, 256  ;;  %p357_p12 = scmp.lt.s32.totalorder %s36_s16, %s36_s16 }
  0x1a   :  { %p353_p11 = scmp.ne.s32.totalorder %s36_s16, %s352_s24  ;;  %p358_p13 = scmp.lt.s32.totalorder %s352_s24, %s352_s24 }
  0x1c   :  { %p359_p0 = por %p358_p13, %p357_p12 }
  0x1e   :  { %p360_p1 = pnand %p359_p0, %p353_p11 }
  0x20   :  { %363 = shalt.err (!%p360_p1)
}
  0x21   :  { %41 = dma.hbm_to_vmem [thread:$0]  %s470_s3, 256, %s36_s16, [#allocation5], %s369_s11, %s369_s11, %s370_s12  }
  0x22   :  { %364 = dma.done.wait [#allocation3], 128  }
  0x23   :  { %365 = vsyncadd [#allocation3], 4294967168 }
  0x24   :  { %366 = dma.done.wait [#allocation5], 256  }
  0x25   :  { %367 = vsyncadd [#allocation5], 4294967040  ;;  %v372_v0 = vmov 0.0   ;;  %vm373_vm0 = vmmov 0   ;;  %v315_v1 = vld [vmem:[#allocation2] sm:$0xff]   ;;  %v56_v3 = vld [vmem:[%s467_s0 + $0x8] sm:$0xff] }
  0x26   :  { %287 = vmatprep.subr.bf16.mxu0 %v372_v0  ;;  %289 = vmatprep.mubr.msk.bf16.mxu0 %vm373_vm0, %v372_v0  ;;  %v55_v2 = vld [vmem:[%s467_s0] sm:$0xff]  ;;  %vm73_vm1 = vcmask 130048   ;;  %v316_v5 = vld [vmem:[#allocation4] sm:$0xff]   ;;  %v317_v6 = vld [vmem:[#allocation4 + $0x8] sm:$0xff]   ;;  %vm144_vm2 = vcmask 261120   ;;  %vm259_vm3 = vcmask 31744  }
  0x27   :  { %293 = vmatprep.subr.bf16.mxu1 %v372_v0  ;;  %297 = vmatprep.mubr.msk.bf16.mxu1 %vm373_vm0, %v372_v0  ;;  %v57_v4 = vpack.c.bf16 %v56_v3, %v55_v2  ;;  %v268_v7 = vld [vmem:[%s469_s2] ss:$0 sm:$0xff]  ;;  %v319_v18 = vld [vmem:[%s472_s5 + $0x8] sm:$0xff]  }
  0x28   :  { %288 = vmatpush3.bf16.msra.mxu0 %v315_v1  ;;  %294 = vmatpush3.bf16.msra.mxu1 %v316_v5  ;;  %v318_v17 = vld [vmem:[%s472_s5] sm:$0xff]  }
  0x29   :  { %301 = vmatprep.subr.bf16.mxu0 %v372_v0  ;;  %295 = vmatprep.subr.bf16.mxu1 %v372_v0  ;;  %v271_v19 = vld [vmem:[%s471_s4] ss:$0 sm:$0xff] }
  0x2a   :  { %v275_v29 = vld [vmem:[%s473_s6] ss:$0 sm:$0xff] }
  0x2b   :  { %290 = vmatmul.mubr.msk.bf16.vlgmr.msra.gmra.mrb[0].mxu0 %vm73_vm1, %v57_v4 }
  0x2c   :  { %305 = vmatprep.mubr.msk.bf16.mxu0 %vm373_vm0, %v372_v0  ;;  %296 = vmatpush3.bf16.msra.mxu1 %v317_v6 }
  0x2d   :  { %302 = vmatpush3.bf16.msra.mxu0 %v318_v17 }
  0x2e   :  { %303 = vmatprep.subr.bf16.mxu0 %v372_v0 }
  0x31   :  { %304 = vmatpush3.bf16.msra.mxu0 %v319_v18 }
  0xfe   :  { %v111_v8 = vpop.f32.mrb[0].mxu0 }
  0xff   :  { %v112_v9 = vadd.f32 %v268_v7, %v111_v8  ;;  %v291_v10 = vpop.f32.mrb[1].mxu0 }
 0x100   :  { %v114_v11 = vpop.f32.mrb[2].mxu0 }
 0x101   :  { %v115_v12 = vadd.f32 %v268_v7, %v114_v11  ;;  %v292_v13 = vpop.f32.mrb[3].mxu0  ;;  %v118_v14 = vmax.f32 %v112_v9, 0.0 }
 0x103   :  { %v119_v15 = vmax.f32 %v115_v12, 0.0 }
 0x105   :  { %v120_v16 = vpack.c.bf16 %v119_v15, %v118_v14 }
 0x107   :  { %298 = vmatmul.mubr.msk.bf16.vlgmr.msra.gmra.mrb[0].mxu1 %vm144_vm2, %v120_v16 }
 0x1da   :  { %v182_v20 = vpop.f32.mrb[0].mxu1 }
 0x1db   :  { %v183_v21 = vadd.f32 %v271_v19, %v182_v20  ;;  %v299_v22 = vpop.f32.mrb[1].mxu1 }
 0x1dc   :  { %v185_v23 = vpop.f32.mrb[2].mxu1 }
 0x1dd   :  { %v186_v24 = vadd.f32 %v271_v19, %v185_v23  ;;  %v300_v25 = vpop.f32.mrb[3].mxu1  ;;  %v189_v26 = vmax.f32 %v183_v21, 0.0 }
 0x1df   :  { %v190_v27 = vmax.f32 %v186_v24, 0.0 }
 0x1e1   :  { %v191_v28 = vpack.c.bf16 %v190_v27, %v189_v26 }
 0x1e3   :  { %306 = vmatmul.mubr.msk.bf16.vlgmr.msra.gmra.mrb[4].mxu0 %vm144_vm2, %v191_v28 }
 0x2b6   :  { %v252_v30 = vpop.f32.mrb[4].mxu0 }
 0x2b7   :  { %v253_v31 = vadd.f32 %v275_v29, %v252_v30  ;;  %v307_v32 = vpop.f32.mrb[5].mxu0 }
 0x2b8   :  { %v255_v33 = vpop.f32.mrb[6].mxu0 }
 0x2b9   :  { %260 = vst.msk [vmem:[%s474_s7] sm:$0xff] %vm259_vm3, %v253_v31  ;;  %v256_v34 = vadd.f32 %v275_v29, %v255_v33  ;;  %v308_v35 = vpop.f32.mrb[7].mxu0 }
 0x2bb   :  { %261 = vst.msk [vmem:[%s474_s7 + $0x8] sm:$0xff] %vm259_vm3, %v256_v34 }
 0x2bc   :  { %266 = vsyncpa [#allocation3], 1 }
 0x2bd   :  { %267 = vsyncpa [#allocation5], 1 }

</bundles_post_ra>
